<compile_context>
chip_gen: v5e
topology: v5e:2x2
jax: 0.10.0
libtpu: 0.0.40
codegen_flags: <defaults>
</compile_context>

<pallas_src>
import functools

import jax
import jax.numpy as jnp
from jax.experimental import pallas as pl
from jax.experimental.pallas import tpu as pltpu

_LANE = 128
_SUBLANE = 8


def _chip_config():
    """Per-generation tuning knobs (conservative defaults if kind is unknown)."""
    kind = ""
    try:
        kind = jax.devices()[0].device_kind.lower()
    except Exception:
        pass
    if "v7" in kind:
        # 2 TCs, 64 MiB VMEM/TC, ~3.2 TB/s: bigger blocks amortize the ~0.35 us
        # per-grid-step overhead; double-buffered in+out (4 x 8 MiB) + temporaries
        # stays well under the 48 MiB scoped limit and 64 MiB physical VMEM.
        return dict(block_bytes=8 << 20, vmem_bytes=48 << 20,
                    core_parallel=True, bf16_compute=True)
    if "v6" in kind:
        return dict(block_bytes=4 << 20, vmem_bytes=32 << 20,
                    core_parallel=False, bf16_compute=True)
    # v5e/v5p (no bf16 VPU/EUP) or unknown device kind.
    return dict(block_bytes=4 << 20, vmem_bytes=32 << 20,
                core_parallel=False, bf16_compute=("v5" not in kind))


def _crisp_sigmoid_kernel(gamma_ref, x_ref, o_ref, *, smooth, compute_dtype):
    # gamma_ref: (1,) f32 in SMEM -> scalar read, no per-step VMEM DMA.
    g = jnp.full((1, 1), gamma_ref[0], dtype=jnp.float32)
    # sigmoid(g) via a single tanh push; computed once per grid step.
    sig_g = 0.5 * jnp.tanh(0.5 * g) + 0.5
    # Exact reciprocal on purpose: one scalar per block (zero per-element cost);
    # approx=True would trade ~1e-3 relative accuracy for nothing here.
    half_scaling = (0.5 * pl.reciprocal(smooth + sig_g)).astype(compute_dtype)
    x = x_ref[...].astype(compute_dtype)
    # sigmoid(z) = 0.5 * tanh(0.5 * z) + 0.5  -> single EUP op per element.
    o_ref[...] = (0.5 * jnp.tanh(x * half_scaling) + 0.5).astype(o_ref.dtype)


def _crisp_sigmoid_flat_aligned(flat, gamma_smem, *, smooth, compute_dtype,
                                block_bytes, vmem_bytes, core_parallel,
                                donate_input):
    """Kernel path for a flat array whose length is a multiple of 128."""
    n = flat.shape[0]
    dtype = flat.dtype
    itemsize = dtype.itemsize

    # Widest lane-dense minor dim that divides n exactly (n % 128 == 0 here).
    lane_w = next(w for w in (8 * _LANE, 4 * _LANE, 2 * _LANE, _LANE)
                  if n % w == 0)
    rows = n // lane_w
    x2d = flat.reshape(rows, lane_w)

    # Row blocks aligned to sublane packing: 8 rows for 32-bit, 16 for bf16, ...
    row_align = _SUBLANE * max(1, 4 // itemsize)
    bm = max(row_align,
             (block_bytes // (lane_w * itemsize)) // row_align * row_align)
    if rows <= bm:
        bm = rows                      # block == full dim -> always legal
    grid = (pl.cdiv(rows, bm),)        # trailing partial block handled by Pallas

    kernel = functools.partial(_crisp_sigmoid_kernel,
                               smooth=smooth, compute_dtype=compute_dtype)

    def call(dim_sem):
        return pl.pallas_call(
            kernel,
            out_shape=jax.ShapeDtypeStruct((rows, lane_w), dtype),
            grid_spec=pltpu.PrefetchScalarGridSpec(
                num_scalar_prefetch=0,
                grid=grid,
                in_specs=[
                    pl.BlockSpec(memory_space=pltpu.MemorySpace.SMEM),  # gamma
                    pl.BlockSpec((bm, lane_w), lambda i: (i, 0)),       # x block
                ],
                out_specs=pl.BlockSpec((bm, lane_w), lambda i: (i, 0)),
            ),
            compiler_params=pltpu.CompilerParams(
                dimension_semantics=dim_sem,
                vmem_limit_bytes=vmem_bytes,
            ),
            cost_estimate=pl.CostEstimate(
                flops=int(4 * n),
                transcendentals=int(n),
                bytes_accessed=int(2 * n * itemsize),
            ),
            input_output_aliases=({1: 0} if donate_input else {}),
        )(gamma_smem, x2d)

    if core_parallel:
        # v7x: shard the row-block grid across both TensorCores so each core
        # streams half the rows through its own DMA path.
        try:
            out2d = call((pltpu.CORE_PARALLEL,))
        except Exception:
            out2d = call(("parallel",))
    else:
        out2d = call(("parallel",))
    return out2d.reshape(-1)


def crisp_sigmoid(x, gamma, *, smooth=0.01, target_block_bytes=None,
                  donate_input=False):
    """CrispSigmoid: sigmoid(x / (smooth + sigmoid(gamma))). x: any shape; gamma: (1,)."""
    orig_shape = x.shape
    orig_dtype = x.dtype
    n = x.size

    cfg = _chip_config()
    block_bytes = (target_block_bytes if target_block_bytes is not None
                   else cfg["block_bytes"])
    if orig_dtype == jnp.bfloat16 and cfg["bf16_compute"]:
        compute_dtype = jnp.bfloat16      # bf16 VPU/EUP on v6e/v7x
    else:
        compute_dtype = jnp.float32       # v5e-safe / non-bf16 inputs

    gamma_smem = gamma.reshape(1).astype(jnp.float32)
    flat = x.reshape(-1)

    n_aligned = (n // _LANE) * _LANE
    if n_aligned == n:
        out = _crisp_sigmoid_flat_aligned(
            flat, gamma_smem, smooth=float(smooth), compute_dtype=compute_dtype,
            block_bytes=block_bytes, vmem_bytes=cfg["vmem_bytes"],
            core_parallel=cfg["core_parallel"], donate_input=donate_input)
        return out.reshape(orig_shape)

    # Ragged element count: kernel on the 128-aligned prefix, tiny plain-XLA
    # sigmoid on the <128-element tail (no whole-array pad + re-slice passes).
    scaling = 1.0 / (float(smooth) + jax.nn.sigmoid(gamma_smem[0]))
    tail = flat[n_aligned:].astype(jnp.float32)
    tail_out = jax.nn.sigmoid(tail * scaling).astype(orig_dtype)
    if n_aligned == 0:
        return tail_out.reshape(orig_shape)
    head_out = _crisp_sigmoid_flat_aligned(
        flat[:n_aligned], gamma_smem, smooth=float(smooth),
        compute_dtype=compute_dtype, block_bytes=block_bytes,
        vmem_bytes=cfg["vmem_bytes"], core_parallel=cfg["core_parallel"],
        donate_input=donate_input)
    return jnp.concatenate([head_out, tail_out]).reshape(orig_shape)


def crisp_sigmoid_ref(x, gamma, smooth=0.01):
    scaling = 1.0 / (smooth + jax.nn.sigmoid(gamma))
    return jax.nn.sigmoid(x * scaling)


if __name__ == "__main__":
    k0, k1, k2 = jax.random.split(jax.random.PRNGKey(0), 3)
    # Deterministic parameter init, matching nn.Parameter(torch.ones(1)).
    gamma = jnp.ones((1,), dtype=jnp.float32)

    # 1) Primary NCHW f32 case (as the UNet3D module would see it).
    x = jax.random.normal(k0, (2, 4, 16, 16), dtype=jnp.float32)
    out = jax.block_until_ready(crisp_sigmoid(x, gamma, smooth=0.01))
    ref = crisp_sigmoid_ref(x, gamma[0], smooth=0.01)
    assert out.shape == x.shape and out.dtype == x.dtype
    assert jnp.allclose(out, ref, atol=1e-5, rtol=1e-5), "mismatch (f32 case)"

    # 2) Multi-step grid with a partial trailing block (forced small block).
    x2 = jax.random.normal(k1, (1, 3, 40, 128), dtype=jnp.float32)
    out2 = jax.block_until_ready(
        crisp_sigmoid(x2, gamma, target_block_bytes=32 * 1024))
    ref2 = crisp_sigmoid_ref(x2, gamma[0])
    assert jnp.allclose(out2, ref2, atol=1e-5, rtol=1e-5), "mismatch (partial block)"

    # 3) Awkward element count (not a multiple of 128) -> aligned-prefix kernel
    #    + tiny XLA tail (no whole-array pad/slice).
    x3 = jax.random.normal(k2, (3, 5, 7, 11), dtype=jnp.float32)
    out3 = jax.block_until_ready(crisp_sigmoid(x3, gamma))
    ref3 = crisp_sigmoid_ref(x3, gamma[0])
    assert jnp.allclose(out3, ref3, atol=1e-5, rtol=1e-5), "mismatch (ragged case)"

    # 4) bf16 storage (bf16 compute on v6e/v7x, f32 compute on v5e).
    xb = x.astype(jnp.bfloat16)
    outb = jax.block_until_ready(crisp_sigmoid(xb, gamma))
    refb = crisp_sigmoid_ref(xb.astype(jnp.float32), gamma[0])
    assert outb.dtype == jnp.bfloat16
    assert jnp.allclose(outb.astype(jnp.float32), refb, atol=2e-2, rtol=2e-2), \
        "mismatch (bf16 case)"

    print("KERNEL_OK")
</pallas_src>

<mosaic_0001>
module attributes {stable_mosaic.version = 11 : i64} {
  func.func @_crisp_sigmoid_kernel(%arg0: i32, %arg1: memref<1xf32, #tpu.memory_space<smem>>, %arg2: memref<2x1024xf32, #tpu.memory_space<vmem>>, %arg3: memref<2x1024xf32, #tpu.memory_space<vmem>>) attributes {dimension_semantics = [#tpu.dimension_semantics<parallel>], iteration_bounds = array<i64: 1>, scalar_prefetch = 0 : i64, scratch_operands = 0 : i64, tpu.core_type = #tpu.core_type<tc>, window_params = [{transform_indices = @transform_0, window_bounds = array<i64: 1>}, {transform_indices = @transform_1, window_bounds = array<i64: 2, 1024>}, {transform_indices = @transform_2, window_bounds = array<i64: 2, 1024>}]} {
    %c0 = arith.constant 0 : index
    %0 = memref.load %arg1[%c0] : memref<1xf32, #tpu.memory_space<smem>>
    %1 = vector.broadcast %0 : f32 to vector<1x1xf32>
    %cst = arith.constant 5.000000e-01 : f32
    %2 = vector.broadcast %cst : f32 to vector<1x1xf32>
    %3 = arith.mulf %2, %1 : vector<1x1xf32>
    %4 = math.tanh %3 : vector<1x1xf32>
    %cst_0 = arith.constant 5.000000e-01 : f32
    %5 = vector.broadcast %cst_0 : f32 to vector<1x1xf32>
    %6 = arith.mulf %5, %4 : vector<1x1xf32>
    %cst_1 = arith.constant 5.000000e-01 : f32
    %7 = vector.broadcast %cst_1 : f32 to vector<1x1xf32>
    %8 = arith.addf %6, %7 : vector<1x1xf32>
    %cst_2 = arith.constant 0.00999999977 : f32
    %9 = vector.broadcast %cst_2 : f32 to vector<1x1xf32>
    %10 = arith.addf %9, %8 : vector<1x1xf32>
    %11 = tpu.reciprocal %10 : vector<1x1xf32> -> vector<1x1xf32>
    %cst_3 = arith.constant 5.000000e-01 : f32
    %12 = vector.broadcast %cst_3 : f32 to vector<1x1xf32>
    %13 = arith.mulf %12, %11 : vector<1x1xf32>
    %c0_4 = arith.constant 0 : index
    %c0_5 = arith.constant 0 : index
    %14 = vector.load %arg2[%c0_4, %c0_5] : memref<2x1024xf32, #tpu.memory_space<vmem>>, vector<2x1024xf32>
    %15 = vector.broadcast %13 : vector<1x1xf32> to vector<2x1024xf32>
    %16 = arith.mulf %14, %15 : vector<2x1024xf32>
    %17 = math.tanh %16 : vector<2x1024xf32>
    %cst_6 = arith.constant 5.000000e-01 : f32
    %18 = vector.broadcast %cst_6 : f32 to vector<2x1024xf32>
    %19 = arith.mulf %18, %17 : vector<2x1024xf32>
    %cst_7 = arith.constant 5.000000e-01 : f32
    %20 = vector.broadcast %cst_7 : f32 to vector<2x1024xf32>
    %21 = arith.addf %19, %20 : vector<2x1024xf32>
    %c0_8 = arith.constant 0 : index
    %c0_9 = arith.constant 0 : index
    %22 = vector.load %arg3[%c0_8, %c0_9] : memref<2x1024xf32, #tpu.memory_space<vmem>>, vector<2x1024xf32>
    tpu.vector_store %arg3[%c0_8, %c0_9], %21 {strides = array<i32>} : memref<2x1024xf32, #tpu.memory_space<vmem>>, vector<2x1024xf32>,
    return
  }
  func.func @transform_0(%arg0: i32) -> i32 {
    %c0_i32 = arith.constant 0 : i32
    %c0_i32_0 = arith.constant 0 : i32
    return %c0_i32 : i32
  }
  func.func @transform_1(%arg0: i32) -> (i32, i32) {
    %c0_i32 = arith.constant 0 : i32
    %c0_i32_0 = arith.constant 0 : i32
    return %arg0, %c0_i32 : i32, i32
  }
  func.func @transform_2(%arg0: i32) -> (i32, i32) {
    %c0_i32 = arith.constant 0 : i32
    %c0_i32_0 = arith.constant 0 : i32
    return %arg0, %c0_i32 : i32, i32
  }
}

</mosaic_0001>

<bundles_post_ra>
// kernel: tpu_custom_call.1
= control target key start
LH: loop header
LB: loop body
LE: loop exit
PB: predicated region body
PF: predicated region fallthrough
CT: control target
= control target key end

     0   :  { %8 = vsyncpa [#allocation4], 0  ;;  %s166_s0 = inlined_call_operand.<no memory space> [shape: f32[1], index: 0, kind: input, shape index: {}]   ;;  %s167_s1 = inlined_call_operand.hbm [shape: f32[2,1024], index: 1, kind: input, shape index: {}]   ;;  %s168_s2 = inlined_call_operand.hbm [shape: f32[2,1024], index: 2, kind: output, shape index: {}]  }
   0x1   :  { %9 = vsyncpa [#allocation5], 0  ;;  %s17_s11 = sshll.u32 %s167_s1, 4  ;;  %s140_s12 = smov [#allocation3]   ;;  %s18_s11 = int_to_ptr.hbm [resolvable:$true] %s17_s11 }
   0x2   :  { %s19_s13 = sshll.u32 %s140_s12, 4  ;;  %s20_s13 = int_to_ptr.vmem [resolvable:$true] %s19_s13 }
   0x3   :  { %22 = dma.hbm_to_vmem [thread:$0]  %s18_s11, 256, %s20_s13, [#allocation4]  }
   0x4   :  { %136 = dma.done.wait [#allocation4], 256  }
   0x5   :  { %137 = vsyncadd [#allocation4], 4294967040  ;;  %v28_v0 = vstv %s166_s0  ;;  %v49_v16 = vld [vmem:[#allocation3] sm:$0xff]  ;;  %v50_v17 = vld [vmem:[#allocation3 + $0x8] sm:$0xff]  ;;  %s141_s0 = smov [#allocation6]   ;;  %s68_s18 = sshll.u32 %s168_s2, 4  ;;  %s69_s18 = int_to_ptr.hbm [resolvable:$true] %s68_s18 }
   0x6   :  { %v29_v1 = vmul.f32 0.5, %v28_v0  ;;  %s66_s1 = sshll.u32 %s141_s0, 4  ;;  %s67_s1 = int_to_ptr.vmem [resolvable:$true] %s66_s1 }
   0x8   :  { %80 = vtanh.f32 %v29_v1 }
   0xe   :  { %v81_v2 = vpop.eup %80 }
   0xf   :  { %v31_v3 = vmul.f32 0.5, %v81_v2 }
  0x11   :  { %v32_v4 = vadd.f32 0.5, %v31_v3 }
  0x13   :  { %v33_v5 = vadd.f32 0.01, %v32_v4 }
  0x15   :  { %82 = vrcp.f32 %v33_v5  ;;  %v45_v8 = vand.u32 2147483648, %v33_v5  ;;  %vm39_vm0 = vweird.f32 %v33_v5  ;;  %v43_v10 = vand.u32 2147483647, %v33_v5 }
  0x17   :  { %v46_v12 = vor.u32 1.1754944e-38, %v45_v8  ;;  %vm44_vm3 = vcmp.eq.f32.partialorder %v43_v10, 8.507059e+37 }
  0x1b   :  { %v83_v6 = vpop.eup %82 }
  0x1c   :  { %v35_v7 = vmul.f32 %v83_v6, %v33_v5  ;;  %vm40_vm1 = vweird.f32 %v83_v6 }
  0x1d   :  { %vm41_vm2 = vmor %vm39_vm0, %vm40_vm1 }
  0x1e   :  { %v36_v9 = vsub.f32 1.0, %v35_v7 }
  0x20   :  { %v37_v11 = vmul.f32 %v83_v6, %v36_v9 }
  0x22   :  { %v38_v13 = vadd.f32 %v83_v6, %v37_v11 }
  0x24   :  { %v42_v14 = vsel %vm41_vm2, %v83_v6, %v38_v13 }
  0x25   :  { %v47_v15 = vsel %vm44_vm3, %v46_v12, %v42_v14 }
  0x26   :  { %v48_v18 = vmul.f32 0.5, %v47_v15 }
  0x28   :  { %v51_v19 = vmul.f32 %v49_v16, %v48_v18  ;;  %v52_v20 = vmul.f32 %v50_v17, %v48_v18 }
  0x2a   :  { %84 = vtanh.f32 %v51_v19 }
  0x2b   :  { %86 = vtanh.f32 %v52_v20 }
  0x30   :  { %v85_v21 = vpop.eup %84 }
  0x31   :  { %v87_v22 = vpop.eup %86  ;;  %v55_v23 = vmul.f32 0.5, %v85_v21 }
  0x32   :  { %v56_v24 = vmul.f32 0.5, %v87_v22 }
  0x33   :  { %v57_v25 = vadd.f32 0.5, %v55_v23 }
  0x34   :  { %v58_v26 = vadd.f32 0.5, %v56_v24 }
  0x35   :  { %59 = vst [vmem:[#allocation6] sm:$0xff] %v57_v25 }
  0x36   :  { %60 = vst [vmem:[#allocation6 + $0x8] sm:$0xff] %v58_v26 }
  0x37   :  { %71 = dma.vmem_to_hbm [thread:$0]  %s67_s1, 256, %s69_s18, [#allocation5]  }
  0x38   :  { %138 = dma.done.wait [#allocation5], 256  }
  0x39   :  { %139 = vsyncadd [#allocation5], 4294967040 }
  0x3a   :  { %76 = vsyncpa [#allocation4], 1 }
  0x3b   :  { %77 = vsyncpa [#allocation5], 1 }

</bundles_post_ra>
